<compile_context>
chip_gen: v7x
topology: tpu7x:2x2x1
jax: 0.10.0
libtpu: 0.0.40
codegen_flags: <defaults>
</compile_context>

<pallas_src>
import jax
import jax.numpy as jnp
from jax.experimental import pallas as pl
from jax.experimental.pallas import tpu as pltpu


def _dann_kernel(f_ref,
                 w1_ref, g1_ref, be1_ref,
                 w2_ref, g2_ref, be2_ref,
                 w3_ref, b3_ref,
                 out_ref):
    eps = 1e-5
    n = f_ref.shape[0]          # 2B (static)
    half = n // 2
    inv_n = 1.0 / n
    inv_half = 1.0 / half

    # ---- layer 1: Linear (bias cancelled by BN) + BatchNorm1d + ReLU ----
    # One M=2B bf16 MXU GEMM over the stacked (f_s; f_t) operand.
    z1 = jnp.dot(f_ref[...], w1_ref[...], preferred_element_type=jnp.float32)  # (2B, H) f32
    s1 = jnp.sum(z1, axis=0, keepdims=True)
    q1 = jnp.sum(z1 * z1, axis=0, keepdims=True)
    mu1 = s1 * inv_n
    var1 = q1 * inv_n - mu1 * mu1                      # biased var (BN training mode)
    scale1 = jax.lax.rsqrt(var1 + eps) * g1_ref[...]   # (1, H) row math
    shift1 = be1_ref[...] - mu1 * scale1
    h1 = jnp.maximum(z1 * scale1 + shift1, 0.0)        # 2 full-tensor VPU ops + relu

    # ---- layer 2: Linear (no bias) + BatchNorm1d + ReLU ----
    z2 = jnp.dot(h1.astype(jnp.bfloat16), w2_ref[...],
                 preferred_element_type=jnp.float32)
    s2 = jnp.sum(z2, axis=0, keepdims=True)
    q2 = jnp.sum(z2 * z2, axis=0, keepdims=True)
    mu2 = s2 * inv_n
    var2 = q2 * inv_n - mu2 * mu2
    scale2 = jax.lax.rsqrt(var2 + eps) * g2_ref[...]
    shift2 = be2_ref[...] - mu2 * scale2
    h2 = jnp.maximum(z2 * scale2 + shift2, 0.0)

    # ---- layer 3: Linear(hidden, 1) as an XLU lane reduce (hidden < ~512) ----
    z3 = jnp.sum(h2 * w3_ref[...], axis=-1, keepdims=True) + b3_ref[...]   # (2B, 1) logits
    z3_s = z3[:half]            # static slices (half is compile-time, multiple of 8)
    z3_t = z3[half:]

    # ---- BCE in logit space ----
    # -log(sigmoid(z)) = softplus(-z);  -log(1 - sigmoid(z)) = softplus(z)
    # PyTorch BCELoss clamps log terms at -100  ->  clamp softplus at 100.
    def softplus(x):
        return jnp.maximum(x, 0.0) + jnp.log1p(jnp.exp(-jnp.abs(x)))

    bce_s = jnp.sum(jnp.minimum(softplus(-z3_s), 100.0), keepdims=True) * inv_half
    bce_t = jnp.sum(jnp.minimum(softplus(z3_t), 100.0), keepdims=True) * inv_half
    loss = 0.5 * (bce_s + bce_t)                                    # (1, 1)

    # ---- discriminator accuracy: pred = (d >= 0.5)  <=>  (z3 >= 0) ----
    acc_s = jnp.sum((z3_s >= 0.0).astype(jnp.float32), keepdims=True) * (100.0 * inv_half)
    acc_t = jnp.sum((z3_t < 0.0).astype(jnp.float32), keepdims=True) * (100.0 * inv_half)
    acc = 0.5 * (acc_s + acc_t)                                     # (1, 1)

    # Scalars go to SMEM -- no vreg constants, no masked VMEM store.
    out_ref[0, 0] = loss[0, 0]
    out_ref[0, 1] = acc[0, 0]


def domain_adversarial_loss(f_s, f_t, params):
    """Forward pass of DomainAdversarialLoss. Returns (loss, domain_disc_accuracy)."""
    # Stack source/target wrapper-side so layer 1 is a single M=2B GEMM.
    f = jnp.concatenate([f_s, f_t], axis=0).astype(jnp.bfloat16)

    args = (
        f,
        params["w1"].astype(jnp.bfloat16),
        params["g1"], params["be1"],
        params["w2"].astype(jnp.bfloat16),
        params["g2"], params["be2"],
        params["w3"], params["b3"],
    )

    # Generation-aware VMEM budget: inputs + live f32 activations, capped at
    # ~0.6x physical VMEM (64 MiB/TC on v7x vs 128 MiB on v5e/v6e).  No grid
    # -> no double-buffering factor.
    hidden = params["w1"].shape[1]
    n_rows = f.shape[0]
    in_bytes = sum(int(a.size) * a.dtype.itemsize for a in args)
    act_bytes = 4 * n_rows * hidden * 4          # z1, h1, z2, h2 (f32)
    try:
        vmem_cap = int(pltpu.get_tpu_info().vmem_capacity_bytes)
    except Exception:
        vmem_cap = 64 << 20                      # conservative (v7x per-TC)
    vmem_bytes = int(min(max(in_bytes + act_bytes + (2 << 20), 4 << 20),
                         int(0.6 * vmem_cap)))

    vmem = pl.BlockSpec(memory_space=pltpu.MemorySpace.VMEM)
    smem = pl.BlockSpec(memory_space=pltpu.MemorySpace.SMEM)
    out = pl.pallas_call(
        _dann_kernel,
        out_shape=jax.ShapeDtypeStruct((1, 2), jnp.float32),
        in_specs=[vmem] * len(args),
        out_specs=smem,
        compiler_params=pltpu.CompilerParams(vmem_limit_bytes=vmem_bytes),
    )(*args)
    return out[0, 0], out[0, 1]


# ----------------------------- references ----------------------------------

def _reference_f32(f_s, f_t, params):
    """Full-precision emulation of the PyTorch module (linear biases included,
    explicit sigmoid + clamped logs)."""
    eps = 1e-5
    f = jnp.concatenate([f_s, f_t], axis=0).astype(jnp.float32)
    half = f_s.shape[0]

    def bn_relu(z, g, be):
        mu = jnp.mean(z, axis=0, keepdims=True)
        var = jnp.mean((z - mu) ** 2, axis=0, keepdims=True)
        return jnp.maximum((z - mu) / jnp.sqrt(var + eps) * g + be, 0.0)

    h1 = bn_relu(f @ params["w1"] + params["b1"], params["g1"], params["be1"])
    h2 = bn_relu(h1 @ params["w2"] + params["b2"], params["g2"], params["be2"])
    z3 = jnp.sum(h2 * params["w3"], axis=-1, keepdims=True) + params["b3"]
    d = jax.nn.sigmoid(z3)
    d_s, d_t = d[:half], d[half:]
    bce_s = -jnp.mean(jnp.maximum(jnp.log(d_s), -100.0))
    bce_t = -jnp.mean(jnp.maximum(jnp.log(1.0 - d_t), -100.0))
    loss = 0.5 * (bce_s + bce_t)
    acc = 0.5 * (100.0 * jnp.mean((d_s >= 0.5).astype(jnp.float32))
                 + 100.0 * jnp.mean((d_t < 0.5).astype(jnp.float32)))
    return loss, acc


def _reference_quantized(f_s, f_t, params):
    """Plain-JAX model using the same quantization / loss form as the kernel
    (bf16 matmul inputs, bias-free linears, folded BN, logit-space BCE)."""
    eps = 1e-5
    half = f_s.shape[0]
    n = 2 * half
    f = jnp.concatenate([f_s, f_t], axis=0).astype(jnp.bfloat16)
    w1 = params["w1"].astype(jnp.bfloat16)
    w2 = params["w2"].astype(jnp.bfloat16)

    def bn_relu(z, g, be):
        mu = jnp.sum(z, axis=0, keepdims=True) / n
        var = jnp.sum(z * z, axis=0, keepdims=True) / n - mu * mu
        scale = jax.lax.rsqrt(var + eps) * g
        shift = be - mu * scale
        return jnp.maximum(z * scale + shift, 0.0)

    z1 = jnp.dot(f, w1, preferred_element_type=jnp.float32)
    h1 = bn_relu(z1, params["g1"], params["be1"])
    z2 = jnp.dot(h1.astype(jnp.bfloat16), w2, preferred_element_type=jnp.float32)
    h2 = bn_relu(z2, params["g2"], params["be2"])
    z3 = jnp.sum(h2 * params["w3"], axis=-1, keepdims=True) + params["b3"]
    z3_s, z3_t = z3[:half], z3[half:]
    sp = lambda x: jnp.maximum(x, 0.0) + jnp.log1p(jnp.exp(-jnp.abs(x)))
    loss = 0.5 * (jnp.mean(jnp.minimum(sp(-z3_s), 100.0))
                  + jnp.mean(jnp.minimum(sp(z3_t), 100.0)))
    acc = 0.5 * (100.0 * jnp.mean((z3_s >= 0.0).astype(jnp.float32))
                 + 100.0 * jnp.mean((z3_t < 0.0).astype(jnp.float32)))
    return loss, acc


def init_params(key, in_feature, hidden):
    """PyTorch-default Linear init; weights stored pre-transposed as (in, out).
    b1/b2 are created for the f32 reference only -- the kernel drops them since
    BatchNorm cancels per-column linear biases exactly."""
    ks = jax.random.split(key, 6)

    def lin(kw, kb, fan_in, shape_w, shape_b):
        bound = float(1.0 / (fan_in ** 0.5))
        w = jax.random.uniform(kw, shape_w, jnp.float32, -bound, bound)
        b = jax.random.uniform(kb, shape_b, jnp.float32, -bound, bound)
        return w, b

    w1, b1 = lin(ks[0], ks[1], in_feature, (in_feature, hidden), (1, hidden))
    w2, b2 = lin(ks[2], ks[3], hidden, (hidden, hidden), (1, hidden))
    w3, b3 = lin(ks[4], ks[5], hidden, (1, hidden), (1, 1))
    ones = jnp.ones((1, hidden), jnp.float32)
    zeros = jnp.zeros((1, hidden), jnp.float32)
    return dict(w1=w1, b1=b1, g1=ones, be1=zeros,
                w2=w2, b2=b2, g2=ones, be2=zeros,
                w3=w3, b3=b3)


if __name__ == "__main__":
    # Lane-dense small shapes: feature dims are multiples of 128, 2B = 16 rows.
    B, D_IN, HIDDEN = 8, 128, 128
    key = jax.random.PRNGKey(0)
    k_fs, k_ft, k_p = jax.random.split(key, 3)
    f_s = jax.random.normal(k_fs, (B, D_IN), jnp.float32)
    f_t = jax.random.normal(k_ft, (B, D_IN), jnp.float32) + 0.5
    params = init_params(k_p, D_IN, HIDDEN)

    loss, acc = jax.jit(domain_adversarial_loss)(f_s, f_t, params)
    jax.block_until_ready((loss, acc))

    # Tight check vs. a plain-JAX model with the same quantization / loss form.
    ref_q_loss, ref_q_acc = _reference_quantized(f_s, f_t, params)
    assert jnp.abs(loss - ref_q_loss) < 2e-3, (loss, ref_q_loss)
    assert jnp.abs(acc - ref_q_acc) <= 6.5, (acc, ref_q_acc)  # tolerate one borderline flip

    # Loose check vs. the full-f32 PyTorch-style forward (sigmoid + clamped logs,
    # linear biases included -- mathematically cancelled by BatchNorm).
    ref_loss, _ = _reference_f32(f_s, f_t, params)
    assert jnp.abs(loss - ref_loss) < 5e-2, (loss, ref_loss)

    print("KERNEL_OK")
</pallas_src>

<mosaic_0001>
module attributes {stable_mosaic.version = 11 : i64} {
  func.func @_dann_kernel(%arg0: memref<16x128xbf16, #tpu.memory_space<vmem>>, %arg1: memref<128x128xbf16, #tpu.memory_space<vmem>>, %arg2: memref<1x128xf32, #tpu.memory_space<vmem>>, %arg3: memref<1x128xf32, #tpu.memory_space<vmem>>, %arg4: memref<128x128xbf16, #tpu.memory_space<vmem>>, %arg5: memref<1x128xf32, #tpu.memory_space<vmem>>, %arg6: memref<1x128xf32, #tpu.memory_space<vmem>>, %arg7: memref<1x128xf32, #tpu.memory_space<vmem>>, %arg8: memref<1x1xf32, #tpu.memory_space<vmem>>, %arg9: memref<1x2xf32, #tpu.memory_space<smem>>) attributes {dimension_semantics = [], scalar_prefetch = 0 : i64, scratch_operands = 0 : i64, tpu.core_type = #tpu.core_type<tc>} {
    %c0 = arith.constant 0 : index
    %c0_0 = arith.constant 0 : index
    %0 = vector.load %arg0[%c0, %c0_0] : memref<16x128xbf16, #tpu.memory_space<vmem>>, vector<16x128xbf16>
    %c0_1 = arith.constant 0 : index
    %c0_2 = arith.constant 0 : index
    %1 = vector.load %arg1[%c0_1, %c0_2] : memref<128x128xbf16, #tpu.memory_space<vmem>>, vector<128x128xbf16>
    %cst = arith.constant dense<0.000000e+00> : vector<16x128xf32>
    %2 = tpu.matmul %0, %1, %cst {dimension_numbers = #tpu.dot_dimension_numbers<[1], [0], [0], [1], [0, 0, 1, 1], [], []>} : vector<16x128xbf16>, vector<128x128xbf16>, vector<16x128xf32> -> vector<16x128xf32>
    %cst_3 = arith.constant dense<0.000000e+00> : vector<128xf32>
    %3 = vector.multi_reduction <add>, %2, %cst_3 [0] : vector<16x128xf32> to vector<128xf32>
    %4 = vector.shape_cast %3 : vector<128xf32> to vector<1x128xf32>
    %5 = arith.mulf %2, %2 : vector<16x128xf32>
    %cst_4 = arith.constant dense<0.000000e+00> : vector<128xf32>
    %6 = vector.multi_reduction <add>, %5, %cst_4 [0] : vector<16x128xf32> to vector<128xf32>
    %7 = vector.shape_cast %6 : vector<128xf32> to vector<1x128xf32>
    %cst_5 = arith.constant 6.250000e-02 : f32
    %8 = vector.broadcast %cst_5 : f32 to vector<1x128xf32>
    %9 = arith.mulf %4, %8 : vector<1x128xf32>
    %cst_6 = arith.constant 6.250000e-02 : f32
    %10 = vector.broadcast %cst_6 : f32 to vector<1x128xf32>
    %11 = arith.mulf %7, %10 : vector<1x128xf32>
    %12 = arith.mulf %9, %9 : vector<1x128xf32>
    %13 = arith.subf %11, %12 : vector<1x128xf32>
    %cst_7 = arith.constant 9.99999974E-6 : f32
    %14 = vector.broadcast %cst_7 : f32 to vector<1x128xf32>
    %15 = arith.addf %13, %14 : vector<1x128xf32>
    %16 = math.rsqrt %15 : vector<1x128xf32>
    %c0_8 = arith.constant 0 : index
    %c0_9 = arith.constant 0 : index
    %17 = vector.load %arg2[%c0_8, %c0_9] : memref<1x128xf32, #tpu.memory_space<vmem>>, vector<1x128xf32>
    %18 = arith.mulf %16, %17 : vector<1x128xf32>
    %c0_10 = arith.constant 0 : index
    %c0_11 = arith.constant 0 : index
    %19 = vector.load %arg3[%c0_10, %c0_11] : memref<1x128xf32, #tpu.memory_space<vmem>>, vector<1x128xf32>
    %20 = arith.mulf %9, %18 : vector<1x128xf32>
    %21 = arith.subf %19, %20 : vector<1x128xf32>
    %22 = vector.broadcast %18 : vector<1x128xf32> to vector<16x128xf32>
    %23 = arith.mulf %2, %22 : vector<16x128xf32>
    %24 = vector.broadcast %21 : vector<1x128xf32> to vector<16x128xf32>
    %25 = arith.addf %23, %24 : vector<16x128xf32>
    %cst_12 = arith.constant 0.000000e+00 : f32
    %26 = vector.broadcast %cst_12 : f32 to vector<16x128xf32>
    %27 = arith.maximumf %25, %26 : vector<16x128xf32>
    %28 = arith.truncf %27 : vector<16x128xf32> to vector<16x128xbf16>
    %c0_13 = arith.constant 0 : index
    %c0_14 = arith.constant 0 : index
    %29 = vector.load %arg4[%c0_13, %c0_14] : memref<128x128xbf16, #tpu.memory_space<vmem>>, vector<128x128xbf16>
    %cst_15 = arith.constant dense<0.000000e+00> : vector<16x128xf32>
    %30 = tpu.matmul %28, %29, %cst_15 {dimension_numbers = #tpu.dot_dimension_numbers<[1], [0], [0], [1], [0, 0, 1, 1], [], []>} : vector<16x128xbf16>, vector<128x128xbf16>, vector<16x128xf32> -> vector<16x128xf32>
    %cst_16 = arith.constant dense<0.000000e+00> : vector<128xf32>
    %31 = vector.multi_reduction <add>, %30, %cst_16 [0] : vector<16x128xf32> to vector<128xf32>
    %32 = vector.shape_cast %31 : vector<128xf32> to vector<1x128xf32>
    %33 = arith.mulf %30, %30 : vector<16x128xf32>
    %cst_17 = arith.constant dense<0.000000e+00> : vector<128xf32>
    %34 = vector.multi_reduction <add>, %33, %cst_17 [0] : vector<16x128xf32> to vector<128xf32>
    %35 = vector.shape_cast %34 : vector<128xf32> to vector<1x128xf32>
    %cst_18 = arith.constant 6.250000e-02 : f32
    %36 = vector.broadcast %cst_18 : f32 to vector<1x128xf32>
    %37 = arith.mulf %32, %36 : vector<1x128xf32>
    %cst_19 = arith.constant 6.250000e-02 : f32
    %38 = vector.broadcast %cst_19 : f32 to vector<1x128xf32>
    %39 = arith.mulf %35, %38 : vector<1x128xf32>
    %40 = arith.mulf %37, %37 : vector<1x128xf32>
    %41 = arith.subf %39, %40 : vector<1x128xf32>
    %cst_20 = arith.constant 9.99999974E-6 : f32
    %42 = vector.broadcast %cst_20 : f32 to vector<1x128xf32>
    %43 = arith.addf %41, %42 : vector<1x128xf32>
    %44 = math.rsqrt %43 : vector<1x128xf32>
    %c0_21 = arith.constant 0 : index
    %c0_22 = arith.constant 0 : index
    %45 = vector.load %arg5[%c0_21, %c0_22] : memref<1x128xf32, #tpu.memory_space<vmem>>, vector<1x128xf32>
    %46 = arith.mulf %44, %45 : vector<1x128xf32>
    %c0_23 = arith.constant 0 : index
    %c0_24 = arith.constant 0 : index
    %47 = vector.load %arg6[%c0_23, %c0_24] : memref<1x128xf32, #tpu.memory_space<vmem>>, vector<1x128xf32>
    %48 = arith.mulf %37, %46 : vector<1x128xf32>
    %49 = arith.subf %47, %48 : vector<1x128xf32>
    %50 = vector.broadcast %46 : vector<1x128xf32> to vector<16x128xf32>
    %51 = arith.mulf %30, %50 : vector<16x128xf32>
    %52 = vector.broadcast %49 : vector<1x128xf32> to vector<16x128xf32>
    %53 = arith.addf %51, %52 : vector<16x128xf32>
    %cst_25 = arith.constant 0.000000e+00 : f32
    %54 = vector.broadcast %cst_25 : f32 to vector<16x128xf32>
    %55 = arith.maximumf %53, %54 : vector<16x128xf32>
    %c0_26 = arith.constant 0 : index
    %c0_27 = arith.constant 0 : index
    %56 = vector.load %arg7[%c0_26, %c0_27] : memref<1x128xf32, #tpu.memory_space<vmem>>, vector<1x128xf32>
    %57 = vector.broadcast %56 : vector<1x128xf32> to vector<16x128xf32>
    %58 = arith.mulf %55, %57 : vector<16x128xf32>
    %cst_28 = arith.constant dense<0.000000e+00> : vector<16xf32>
    %59 = vector.multi_reduction <add>, %58, %cst_28 [1] : vector<16x128xf32> to vector<16xf32>
    %60 = vector.shape_cast %59 : vector<16xf32> to vector<16x1xf32>
    %c0_29 = arith.constant 0 : index
    %c0_30 = arith.constant 0 : index
    %61 = vector.load %arg8[%c0_29, %c0_30] : memref<1x1xf32, #tpu.memory_space<vmem>>, vector<1x1xf32>
    %62 = vector.broadcast %61 : vector<1x1xf32> to vector<16x1xf32>
    %63 = arith.addf %60, %62 : vector<16x1xf32>
    %64 = vector.extract_strided_slice %63 {offsets = [0, 0], sizes = [8, 1], strides = [1, 1]} : vector<16x1xf32> to vector<8x1xf32>
    %65 = vector.extract_strided_slice %63 {offsets = [8, 0], sizes = [8, 1], strides = [1, 1]} : vector<16x1xf32> to vector<8x1xf32>
    %cst_31 = arith.constant 0.000000e+00 : f32
    %66 = vector.broadcast %cst_31 : f32 to vector<8x1xf32>
    %67 = arith.subf %66, %64 : vector<8x1xf32>
    %cst_32 = arith.constant 0.000000e+00 : f32
    %68 = vector.broadcast %cst_32 : f32 to vector<8x1xf32>
    %69 = arith.maximumf %67, %68 : vector<8x1xf32>
    %70 = math.absf %67 : vector<8x1xf32>
    %cst_33 = arith.constant 0.000000e+00 : f32
    %71 = vector.broadcast %cst_33 : f32 to vector<8x1xf32>
    %72 = arith.subf %71, %70 : vector<8x1xf32>
    %73 = math.exp %72 : vector<8x1xf32>
    %74 = math.log1p %73 : vector<8x1xf32>
    %75 = arith.addf %69, %74 : vector<8x1xf32>
    %cst_34 = arith.constant 1.000000e+02 : f32
    %76 = vector.broadcast %cst_34 : f32 to vector<8x1xf32>
    %77 = arith.minimumf %75, %76 : vector<8x1xf32>
    %78 = vector.shape_cast %77 : vector<8x1xf32> to vector<1x8x1xf32>
    %cst_35 = arith.constant dense<0.000000e+00> : vector<1xf32>
    %79 = vector.multi_reduction <add>, %78, %cst_35 [1, 2] : vector<1x8x1xf32> to vector<1xf32>
    %80 = vector.shape_cast %79 : vector<1xf32> to vector<1x1x1xf32>
    %81 = vector.extract %80[0, 0, 0] : f32 from vector<1x1x1xf32>
    %82 = vector.broadcast %81 : f32 to vector<1x1xf32>
    %cst_36 = arith.constant 1.250000e-01 : f32
    %83 = vector.broadcast %cst_36 : f32 to vector<1x1xf32>
    %84 = arith.mulf %82, %83 : vector<1x1xf32>
    %cst_37 = arith.constant 0.000000e+00 : f32
    %85 = vector.broadcast %cst_37 : f32 to vector<8x1xf32>
    %86 = arith.maximumf %65, %85 : vector<8x1xf32>
    %87 = math.absf %65 : vector<8x1xf32>
    %cst_38 = arith.constant 0.000000e+00 : f32
    %88 = vector.broadcast %cst_38 : f32 to vector<8x1xf32>
    %89 = arith.subf %88, %87 : vector<8x1xf32>
    %90 = math.exp %89 : vector<8x1xf32>
    %91 = math.log1p %90 : vector<8x1xf32>
    %92 = arith.addf %86, %91 : vector<8x1xf32>
    %cst_39 = arith.constant 1.000000e+02 : f32
    %93 = vector.broadcast %cst_39 : f32 to vector<8x1xf32>
    %94 = arith.minimumf %92, %93 : vector<8x1xf32>
    %95 = vector.shape_cast %94 : vector<8x1xf32> to vector<1x8x1xf32>
    %cst_40 = arith.constant dense<0.000000e+00> : vector<1xf32>
    %96 = vector.multi_reduction <add>, %95, %cst_40 [1, 2] : vector<1x8x1xf32> to vector<1xf32>
    %97 = vector.shape_cast %96 : vector<1xf32> to vector<1x1x1xf32>
    %98 = vector.extract %97[0, 0, 0] : f32 from vector<1x1x1xf32>
    %99 = vector.broadcast %98 : f32 to vector<1x1xf32>
    %cst_41 = arith.constant 1.250000e-01 : f32
    %100 = vector.broadcast %cst_41 : f32 to vector<1x1xf32>
    %101 = arith.mulf %99, %100 : vector<1x1xf32>
    %102 = arith.addf %84, %101 : vector<1x1xf32>
    %cst_42 = arith.constant 5.000000e-01 : f32
    %103 = vector.broadcast %cst_42 : f32 to vector<1x1xf32>
    %104 = arith.mulf %103, %102 : vector<1x1xf32>
    %cst_43 = arith.constant 0.000000e+00 : f32
    %105 = vector.broadcast %cst_43 : f32 to vector<8x1xf32>
    %106 = arith.cmpf oge, %64, %105 : vector<8x1xf32>
    %107 = arith.extui %106 : vector<8x1xi1> to vector<8x1xi32>
    %108 = arith.sitofp %107 : vector<8x1xi32> to vector<8x1xf32>
    %109 = vector.shape_cast %108 : vector<8x1xf32> to vector<1x8x1xf32>
    %cst_44 = arith.constant dense<0.000000e+00> : vector<1xf32>
    %110 = vector.multi_reduction <add>, %109, %cst_44 [1, 2] : vector<1x8x1xf32> to vector<1xf32>
    %111 = vector.shape_cast %110 : vector<1xf32> to vector<1x1x1xf32>
    %112 = vector.extract %111[0, 0, 0] : f32 from vector<1x1x1xf32>
    %113 = vector.broadcast %112 : f32 to vector<1x1xf32>
    %cst_45 = arith.constant 1.250000e+01 : f32
    %114 = vector.broadcast %cst_45 : f32 to vector<1x1xf32>
    %115 = arith.mulf %113, %114 : vector<1x1xf32>
    %cst_46 = arith.constant 0.000000e+00 : f32
    %116 = vector.broadcast %cst_46 : f32 to vector<8x1xf32>
    %117 = arith.cmpf olt, %65, %116 : vector<8x1xf32>
    %118 = arith.extui %117 : vector<8x1xi1> to vector<8x1xi32>
    %119 = arith.sitofp %118 : vector<8x1xi32> to vector<8x1xf32>
    %120 = vector.shape_cast %119 : vector<8x1xf32> to vector<1x8x1xf32>
    %cst_47 = arith.constant dense<0.000000e+00> : vector<1xf32>
    %121 = vector.multi_reduction <add>, %120, %cst_47 [1, 2] : vector<1x8x1xf32> to vector<1xf32>
    %122 = vector.shape_cast %121 : vector<1xf32> to vector<1x1x1xf32>
    %123 = vector.extract %122[0, 0, 0] : f32 from vector<1x1x1xf32>
    %124 = vector.broadcast %123 : f32 to vector<1x1xf32>
    %cst_48 = arith.constant 1.250000e+01 : f32
    %125 = vector.broadcast %cst_48 : f32 to vector<1x1xf32>
    %126 = arith.mulf %124, %125 : vector<1x1xf32>
    %127 = arith.addf %115, %126 : vector<1x1xf32>
    %cst_49 = arith.constant 5.000000e-01 : f32
    %128 = vector.broadcast %cst_49 : f32 to vector<1x1xf32>
    %129 = arith.mulf %128, %127 : vector<1x1xf32>
    %130 = vector.extract %104[0, 0] : f32 from vector<1x1xf32>
    %c0_50 = arith.constant 0 : index
    %c0_51 = arith.constant 0 : index
    %131 = memref.load %arg9[%c0_50, %c0_51] : memref<1x2xf32, #tpu.memory_space<smem>>
    memref.store %130, %arg9[%c0_50, %c0_51] : memref<1x2xf32, #tpu.memory_space<smem>>
    %132 = vector.extract %129[0, 0] : f32 from vector<1x1xf32>
    %c0_52 = arith.constant 0 : index
    %c1 = arith.constant 1 : index
    %133 = memref.load %arg9[%c0_52, %c1] : memref<1x2xf32, #tpu.memory_space<smem>>
    memref.store %132, %arg9[%c0_52, %c1] : memref<1x2xf32, #tpu.memory_space<smem>>
    return
  }
}

</mosaic_0001>

<bundles_post_ra>
// kernel: domain_adversarial_loss.1
= control target key start
LH: loop header
LB: loop body
LE: loop exit
PB: predicated region body
PF: predicated region fallthrough
CT: control target
= control target key end

     0   :  { %s762_s0 = inlined_call_operand.vmem [shape: bf16[16,128], index: 0, kind: input, shape index: {}]   ;;  %s763_s1 = inlined_call_operand.vmem [shape: bf16[128,128], index: 1, kind: input, shape index: {}]   ;;  %s764_s2 = inlined_call_operand.vmem [shape: f32[1,128], index: 2, kind: input, shape index: {}]   ;;  %s765_s3 = inlined_call_operand.vmem [shape: f32[1,128], index: 3, kind: input, shape index: {}]   ;;  %s766_s4 = inlined_call_operand.vmem [shape: bf16[128,128], index: 4, kind: input, shape index: {}]   ;;  %s767_s5 = inlined_call_operand.vmem [shape: f32[1,128], index: 5, kind: input, shape index: {}]   ;;  %s768_s6 = inlined_call_operand.vmem [shape: f32[1,128], index: 6, kind: input, shape index: {}]   ;;  %s769_s7 = inlined_call_operand.vmem [shape: f32[1,128], index: 7, kind: input, shape index: {}]   ;;  %s770_s8 = inlined_call_operand.<no memory space> [shape: f32[1,1], index: 8, kind: input, shape index: {}]   ;;  %s771_s9 = inlined_call_operand.vmem [shape: f32[1,2], index: 9, kind: output, shape index: {}]  }
   0x1   :  { %v14_v0 = vstv %s770_s8 }
   0x2   :  { %15 = vst [vmem:[#allocation2] sm:$0x1] %v14_v0 }
   0x3   :  { %v570_v1 = vld [vmem:[%s763_s1] sm:$0xff]   ;;  %v613_v2 = vmov 0.0   ;;  %v571_v3 = vld [vmem:[%s763_s1 + $0x8] sm:$0xff]   ;;  %vm614_vm0 = vmmov 0   ;;  %v572_v4 = vld [vmem:[%s763_s1 + $0x10] sm:$0xff]  }
   0x4   :  { %515 = vmatprep.subr.bf16.mxu0 %v613_v2  ;;  %535 = vmatprep.subr.bf16.mxu1 %v613_v2  ;;  %v573_v5 = vld [vmem:[%s763_s1 + $0x18] sm:$0xff]   ;;  %v574_v6 = vld [vmem:[%s763_s1 + $0x20] sm:$0xff]  }
   0x5   :  { %516 = vmatpush3.bf16.msra.mxu0 %v570_v1  ;;  %531 = vmatprep.mubr.msk.bf16.mxu0 %vm614_vm0, %v613_v2 }
   0x6   :  { %517 = vmatprep.subr.bf16.mxu0 %v613_v2  ;;  %551 = vmatprep.mubr.msk.bf16.mxu1 %vm614_vm0, %v613_v2 }
   0x9   :  { %518 = vmatpush3.bf16.msra.mxu0 %v571_v3 }
   0xa   :  { %519 = vmatprep.subr.bf16.mxu0 %v613_v2 }
   0xd   :  { %520 = vmatpush3.bf16.msra.mxu0 %v572_v4 }
   0xe   :  { %521 = vmatprep.subr.bf16.mxu0 %v613_v2 }
  0x11   :  { %522 = vmatpush3.bf16.msra.mxu0 %v573_v5 }
  0x12   :  { %16 = vsyncpa [#allocation4], 0  ;;  %523 = vmatprep.subr.bf16.mxu0 %v613_v2  ;;  %v575_v7 = vld [vmem:[%s763_s1 + $0x28] sm:$0xff]   ;;  %v576_v8 = vld [vmem:[%s763_s1 + $0x30] sm:$0xff]   ;;  %v176_v44 = vlaneseq  ;;  %vm380_vm1 = vcmask 7168   ;;  %s467_s30 = sshll.u32 %s771_s9, 4  ;;  %s468_s30 = int_to_ptr.vmem [resolvable:$true] %s467_s30 }
  0x13   :  { %v577_v9 = vld [vmem:[%s763_s1 + $0x38] sm:$0xff]   ;;  %v578_v10 = vld [vmem:[%s762_s0] sm:$0xff]   ;;  %v580_v12 = vld [vmem:[%s766_s4 + $0x8] sm:$0xff]   ;;  %s599_s11 = scalar_lea.vmem %s468_s30, 16  ;;  %p604_p1 = scmp.lt.s32.totalorder %s468_s30, %s468_s30 }
  0x14   :  { %v579_v11 = vld [vmem:[%s766_s4] sm:$0xff]   ;;  %v581_v13 = vld [vmem:[%s766_s4 + $0x10] sm:$0xff]   ;;  %v582_v14 = vld [vmem:[%s766_s4 + $0x18] sm:$0xff]   ;;  %v177_v45 = vshrl.u32 %v176_v44, 7  ;;  %p600_p0 = scmp.ne.s32.totalorder %s468_s30, %s599_s11  ;;  %p605_p2 = scmp.lt.s32.totalorder %s599_s11, %s599_s11 }
  0x15   :  { %524 = vmatpush3.bf16.msra.mxu0 %v574_v6  ;;  %536 = vmatpush3.bf16.msra.mxu1 %v579_v11  ;;  %v583_v15 = vld [vmem:[%s766_s4 + $0x20] sm:$0xff]   ;;  %v584_v16 = vld [vmem:[%s766_s4 + $0x28] sm:$0xff]   ;;  %v585_v17 = vld [vmem:[%s766_s4 + $0x30] sm:$0xff]  }
  0x16   :  { %525 = vmatprep.subr.bf16.mxu0 %v613_v2  ;;  %537 = vmatprep.subr.bf16.mxu1 %v613_v2  ;;  %v586_v18 = vld [vmem:[%s766_s4 + $0x38] sm:$0xff]   ;;  %v171_v46 = vld [vmem:[%s764_s2] sm:$0x1]  ;;  %v178_v47 = vsub.s32 0, %v177_v45  ;;  %p606_p3 = por %p605_p2, %p604_p1 }
  0x17   :  { %v173_v50 = vld [vmem:[%s765_s3] sm:$0x1] }
  0x18   :  { %p607_p4 = pnand %p606_p3, %p600_p0 }
  0x19   :  { %526 = vmatpush3.bf16.msra.mxu0 %v575_v7  ;;  %538 = vmatpush3.bf16.msra.mxu1 %v580_v12 }
  0x1a   :  { %527 = vmatprep.subr.bf16.mxu0 %v613_v2  ;;  %539 = vmatprep.subr.bf16.mxu1 %v613_v2 }
  0x1d   :  { %528 = vmatpush3.bf16.msra.mxu0 %v576_v8  ;;  %540 = vmatpush3.bf16.msra.mxu1 %v581_v13 }
  0x1e   :  { %529 = vmatprep.subr.bf16.mxu0 %v613_v2  ;;  %541 = vmatprep.subr.bf16.mxu1 %v613_v2 }
  0x21   :  { %530 = vmatpush3.bf16.msra.mxu0 %v577_v9  ;;  %542 = vmatpush3.bf16.msra.mxu1 %v582_v14 }
  0x22   :  { %543 = vmatprep.subr.bf16.mxu1 %v613_v2 }
  0x24   :  { %532 = vmatmul.mubr.bf16.vlgmr.msra.gmra.mrb[0].mxu0 %v578_v10 }
  0x25   :  { %544 = vmatpush3.bf16.msra.mxu1 %v583_v15 }
  0x26   :  { %545 = vmatprep.subr.bf16.mxu1 %v613_v2 }
  0x29   :  { %546 = vmatpush3.bf16.msra.mxu1 %v584_v16 }
  0x2a   :  { %547 = vmatprep.subr.bf16.mxu1 %v613_v2 }
  0x2d   :  { %548 = vmatpush3.bf16.msra.mxu1 %v585_v17 }
  0x2e   :  { %549 = vmatprep.subr.bf16.mxu1 %v613_v2 }
  0x31   :  { %550 = vmatpush3.bf16.msra.mxu1 %v586_v18 }
  0xf7   :  { %v142_v19 = vpop.f32.mrb[0].mxu0 }
  0xf8   :  { %v533_v20 = vpop.f32.mrb[1].mxu0  ;;  %v156_v22 = vmul.f32 %v142_v19, %v142_v19 }
  0xf9   :  { %v145_v21 = vpop.f32.mrb[2].mxu0 }
  0xfa   :  { %v149_v23 = vadd.f32 %v145_v21, %v142_v19  ;;  %v157_v24 = vmul.f32 %v145_v21, %v145_v21  ;;  %v534_v25 = vpop.f32.mrb[3].mxu0 }
  0xfc   :  { %v150_v26 = vrot.slane %v149_v23, 4  ;;  %v158_v27 = vadd.f32 %v157_v24, %v156_v22  ;;  %v320_v24 = vld [vmem:[%s767_s5] sm:$0x1] }
  0xfe   :  { %v151_v28 = vadd.f32 %v150_v26, %v149_v23  ;;  %v159_v29 = vrot.slane %v158_v27, 4 }
 0x100   :  { %v152_v30 = vrot.slane %v151_v28, 2  ;;  %v160_v31 = vadd.f32 %v159_v29, %v158_v27  ;;  %v322_v27 = vld [vmem:[%s768_s6] sm:$0x1] }
 0x102   :  { %v153_v32 = vadd.f32 %v152_v30, %v151_v28  ;;  %v161_v33 = vrot.slane %v160_v31, 2 }
 0x104   :  { %v154_v34 = vrot.slane %v153_v32, 1  ;;  %v162_v35 = vadd.f32 %v161_v33, %v160_v31 }
 0x106   :  { %v155_v36 = vadd.f32 %v154_v34, %v153_v32  ;;  %v163_v37 = vrot.slane %v162_v35, 1 }
 0x108   :  { %v164_v38 = vadd.f32 %v163_v37, %v162_v35  ;;  %v165_v39 = vmul.f32 0.0625, %v155_v36  ;;  %v493_v36 = vld [vmem:[%s769_s7] ss:$0 sm:$0xff] }
 0x10a   :  { %v166_v40 = vmul.f32 0.0625, %v164_v38  ;;  %v167_v41 = vmul.f32 %v165_v39, %v165_v39 }
 0x10c   :  { %v168_v42 = vsub.f32 %v166_v40, %v167_v41  ;;  %v494_v41 = vld [vmem:[#allocation2] ss:$0 sm:$0xff] }
 0x10e   :  { %v169_v43 = vadd.f32 1e-05, %v168_v42 }
 0x110   :  { %587 = vrsqrt.f32 %v169_v43 }
 0x11a   :  { %v588_v48 = vpop.eup %587 }
 0x11b   :  { %v172_v49 = vmul.f32 %v588_v48, %v171_v46 }
 0x11d   :  { %v174_v51 = vmul.f32 %v172_v49, %v165_v39  ;;  %v179_v52 = vrot.slane %v172_v49, %v178_v47 }
 0x11f   :  { %v175_v53 = vsub.f32 %v173_v50, %v174_v51  ;;  %v180_v54 = vmul.f32 %v179_v52, %v142_v19  ;;  %v181_v55 = vmul.f32 %v179_v52, %v145_v21 }
 0x121   :  { %v186_v56 = vrot.slane %v175_v53, %v178_v47 }
 0x123   :  { %v189_v57 = vadd.f32 %v186_v56, %v181_v55  ;;  %v188_v58 = vadd.f32 %v186_v56, %v180_v54 }
 0x125   :  { %v190_v59 = vmax.f32 %v188_v58, 0.0  ;;  %v191_v60 = vmax.f32 %v189_v57, 0.0 }
 0x127   :  { %v192_v61 = vpack.c.bf16 %v191_v60, %v190_v59 }
 0x129   :  { %552 = vmatmul.mubr.bf16.vlgmr.msra.gmra.mrb[0].mxu1 %v192_v61 }
 0x1fc   :  { %v291_v62 = vpop.f32.mrb[0].mxu1 }
 0x1fd   :  { %v553_v63 = vpop.f32.mrb[1].mxu1  ;;  %v305_v1 = vmul.f32 %v291_v62, %v291_v62 }
 0x1fe   :  { %v294_v0 = vpop.f32.mrb[2].mxu1 }
 0x1ff   :  { %v298_v3 = vadd.f32 %v294_v0, %v291_v62  ;;  %v306_v4 = vmul.f32 %v294_v0, %v294_v0  ;;  %v554_v5 = vpop.f32.mrb[3].mxu1 }
 0x201   :  { %v299_v6 = vrot.slane %v298_v3, 4  ;;  %v307_v7 = vadd.f32 %v306_v4, %v305_v1 }
 0x203   :  { %v300_v8 = vadd.f32 %v299_v6, %v298_v3  ;;  %v308_v9 = vrot.slane %v307_v7, 4 }
 0x205   :  { %v301_v10 = vrot.slane %v300_v8, 2  ;;  %v309_v11 = vadd.f32 %v308_v9, %v307_v7 }
 0x207   :  { %v302_v12 = vadd.f32 %v301_v10, %v300_v8  ;;  %v310_v13 = vrot.slane %v309_v11, 2 }
 0x209   :  { %v303_v14 = vrot.slane %v302_v12, 1  ;;  %v311_v15 = vadd.f32 %v310_v13, %v309_v11 }
 0x20b   :  { %v304_v16 = vadd.f32 %v303_v14, %v302_v12  ;;  %v312_v17 = vrot.slane %v311_v15, 1 }
 0x20d   :  { %v313_v18 = vadd.f32 %v312_v17, %v311_v15  ;;  %v314_v19 = vmul.f32 0.0625, %v304_v16 }
 0x20f   :  { %v315_v20 = vmul.f32 0.0625, %v313_v18  ;;  %v316_v21 = vmul.f32 %v314_v19, %v314_v19 }
 0x211   :  { %v317_v22 = vsub.f32 %v315_v20, %v316_v21 }
 0x213   :  { %v318_v23 = vadd.f32 1e-05, %v317_v22 }
 0x215   :  { %589 = vrsqrt.f32 %v318_v23 }
 0x21f   :  { %v590_v25 = vpop.eup %589 }
 0x220   :  { %v321_v26 = vmul.f32 %v590_v25, %v320_v24 }
 0x222   :  { %v328_v28 = vrot.slane %v321_v26, %v178_v47  ;;  %v323_v29 = vmul.f32 %v321_v26, %v314_v19 }
 0x224   :  { %v330_v30 = vmul.f32 %v328_v28, %v294_v0  ;;  %v324_v31 = vsub.f32 %v322_v27, %v323_v29  ;;  %v329_v32 = vmul.f32 %v328_v28, %v291_v62 }
 0x226   :  { %v335_v33 = vrot.slane %v324_v31, %v178_v47 }
 0x228   :  { %v337_v34 = vadd.f32 %v335_v33, %v329_v32  ;;  %v338_v35 = vadd.f32 %v335_v33, %v330_v30 }
 0x22a   :  { %v339_v37 = vmax.f32 %v337_v34, 0.0  ;;  %v340_v39 = vmax.f32 %v338_v35, 0.0 }
 0x22c   :  { %v348_v38 = vmul.f32 %v493_v36, %v339_v37  ;;  %v349_v40 = vmul.f32 %v493_v36, %v340_v39 }
 0x22e   :  { %350 = vadd.xlane.f32.xlu0 %v348_v38 }
 0x232   :  { %352 = vadd.xlane.f32.xlu0 %v349_v40 }
 0x2bb   :  { %v351_v42 = vpop.xlane.xlu0 %350 }
 0x2bc   :  { %v361_v43 = vadd.f32 %v494_v41, %v351_v42 }
 0x2be   :  { %v363_v44 = vsub.f32 0.0, %v361_v43  ;;  %vm423_vm2 = vcmp.ge.f32.partialorder %v361_v43, 0.0 }
 0x2bf   :  { %v353_v45 = vpop.xlane.xlu0 %352  ;;  %v495_v46 = vsel %vm423_vm2, 1.0, %v613_v2 }
 0x2c0   :  { %v365_v47 = vand.u32 2147483647, %v363_v44  ;;  %v362_v48 = vadd.f32 %v494_v41, %v353_v45  ;;  %v426_v49 = vsel %vm380_vm1, %v495_v46, 0.0  ;;  %v364_v9 = vmax.f32 %v363_v44, 0.0 }
 0x2c1   :  { %427 = vadd.xlane.f32.xlu0 %v426_v49 }
 0x2c2   :  { %v366_v50 = vsub.f32 0.0, %v365_v47  ;;  %v394_v51 = vand.u32 2147483647, %v362_v48  ;;  %v393_v10 = vmax.f32 %v362_v48, 0.0  ;;  %vm438_vm5 = vcmp.lt.f32.partialorder %v362_v48, 0.0 }
 0x2c3   :  { %v496_v18 = vsel %vm438_vm5, 1.0, %v613_v2 }
 0x2c4   :  { %v367_v52 = vmul.f32 1.442695, %v366_v50  ;;  %v395_v53 = vsub.f32 0.0, %v394_v51  ;;  %v441_v19 = vsel %vm380_vm1, %v496_v18, 0.0 }
 0x2c6   :  { %591 = vpow2.f32 %v367_v52  ;;  %v396_v54 = vmul.f32 1.442695, %v395_v53 }
 0x2c8   :  { %593 = vpow2.f32 %v396_v54 }
 0x2d0   :  { %v592_v55 = vpop.eup %591 }
 0x2d1   :  { %v369_v56 = vadd.f32 1.0, %v592_v55  ;;  %v372_v59 = vmul.f32 -0.5, %v592_v55  ;;  %v375_v62 = vand.u32 2147483647, %v592_v55 }
 0x2d2   :  { %v594_v57 = vpop.eup %593 }
 0x2d3   :  { %v398_v58 = vadd.f32 1.0, %v594_v57  ;;  %595 = vlog2.f32 %v369_v56  ;;  %v401_v60 = vmul.f32 -0.5, %v594_v57  ;;  %v373_v61 = vadd.f32 1.0, %v372_v59 }
 0x2d4   :  { %v404_v1 = vand.u32 2147483647, %v594_v57  ;;  %vm376_vm3 = vcmp.lt.f32.partialorder %v375_v62, 0.0004427343 }
 0x2d5   :  { %597 = vlog2.f32 %v398_v58  ;;  %v402_v63 = vadd.f32 1.0, %v401_v60  ;;  %v374_v4 = vmul.f32 %v592_v55, %v373_v61 }
 0x2d6   :  { %vm405_vm4 = vcmp.lt.f32.partialorder %v404_v1, 0.0004427343 }
 0x2d7   :  { %v403_v7 = vmul.f32 %v594_v57, %v402_v63 }
 0x2dd   :  { %v596_v0 = vpop.eup %595 }
 0x2de   :  { %v371_v3 = vmul.f32 0.6931472, %v596_v0 }
 0x2df   :  { %v598_v5 = vpop.eup %597 }
 0x2e0   :  { %v400_v6 = vmul.f32 0.6931472, %v598_v5  ;;  %v377_v8 = vsel %vm376_vm3, %v374_v4, %v371_v3 }
 0x2e1   :  { %v378_v13 = vadd.f32 %v377_v8, %v364_v9 }
 0x2e2   :  { %v406_v11 = vsel %vm405_vm4, %v403_v7, %v400_v6 }
 0x2e3   :  { %v407_v12 = vadd.f32 %v406_v11, %v393_v10  ;;  %v379_v16 = vmin.f32 %v378_v13, 100.0 }
 0x2e5   :  { %v408_v14 = vmin.f32 %v407_v12, 100.0  ;;  %v381_v17 = vsel %vm380_vm1, %v379_v16, 0.0 }
 0x2e7   :  { %v409_v15 = vsel %vm380_vm1, %v408_v14, 0.0 }
 0x2e8   :  { %410 = vadd.xlane.f32.xlu1 %v409_v15 }
 0x2ec   :  { %382 = vadd.xlane.f32.xlu1 %v381_v17 }
 0x2f0   :  { %442 = vadd.xlane.f32.xlu1 %v441_v19 }
 0x34e   :  { %v428_v20 = vpop.xlane.xlu0 %427 }
 0x34f   :  { %v429_v21 = vrot.slane %v428_v20, 4 }
 0x351   :  { %v430_v23 = vadd.f32 %v429_v21, %v428_v20 }
 0x353   :  { %v431_v27 = vrot.slane %v430_v23, 2 }
 0x355   :  { %v432_v33 = vadd.f32 %v431_v27, %v430_v23 }
 0x357   :  { %v433_v40 = vrot.slane %v432_v33, 1 }
 0x359   :  { %v434_v44 = vadd.f32 %v433_v40, %v432_v33 }
 0x375   :  { %v411_v22 = vpop.xlane.xlu1 %410 }
 0x376   :  { %v412_v24 = vrot.slane %v411_v22, 4 }
 0x378   :  { %v413_v25 = vadd.f32 %v412_v24, %v411_v22 }
 0x379   :  { %v383_v26 = vpop.xlane.xlu1 %382 }
 0x37a   :  { %v414_v28 = vrot.slane %v413_v25, 2  ;;  %v384_v29 = vrot.slane %v383_v26, 4 }
 0x37c   :  { %v385_v30 = vadd.f32 %v384_v29, %v383_v26  ;;  %v415_v32 = vadd.f32 %v414_v28, %v413_v25 }
 0x37d   :  { %v443_v31 = vpop.xlane.xlu1 %442 }
 0x37e   :  { %v386_v34 = vrot.slane %v385_v30, 2  ;;  %v444_v35 = vrot.slane %v443_v31, 4  ;;  %v416_v37 = vrot.slane %v415_v32, 1 }
 0x380   :  { %v445_v2 = vadd.f32 %v444_v35, %v443_v31  ;;  %v387_v36 = vadd.f32 %v386_v34, %v385_v30  ;;  %v417_v43 = vadd.f32 %v416_v37, %v415_v32 }
 0x382   :  { %v446_v38 = vrot.slane %v445_v2, 2  ;;  %v388_v39 = vrot.slane %v387_v36, 1 }
 0x384   :  { %v447_v41 = vadd.f32 %v446_v38, %v445_v2  ;;  %v389_v42 = vadd.f32 %v388_v39, %v387_v36 }
 0x386   :  { %555 = vpush %v389_v42  ;;  %v448_v45 = vrot.slane %v447_v41, 1 }
 0x387   :  { %557 = vpush %v417_v43 }
 0x388   :  { %559 = vpush %v434_v44  ;;  %v449_v46 = vadd.f32 %v448_v45, %v447_v41 }
 0x38a   :  { %561 = vpush %v449_v46 }
 0x3b7   :  { %s556_s5 = spop %555 }
 0x3b8   :  { %v391_v47 = vstv %s556_s5  ;;  %s558_s6 = spop %557 }
 0x3b9   :  { %v392_v48 = vmul.f32 0.125, %v391_v47  ;;  %v419_v49 = vstv %s558_s6  ;;  %s560_s7 = spop %559 }
 0x3ba   :  { %v420_v50 = vmul.f32 0.125, %v419_v49  ;;  %v436_v51 = vstv %s560_s7 }
 0x3bb   :  { %s562_s27 = spop %561  ;;  %v437_v54 = vmul.f32 12.5, %v436_v51 }
 0x3bc   :  { %v451_v52 = vstv %s562_s27  ;;  %v421_v53 = vadd.f32 %v420_v50, %v392_v48 }
 0x3bd   :  { %v452_v55 = vmul.f32 12.5, %v451_v52 }
 0x3be   :  { %v422_v56 = vmul.f32 0.5, %v421_v53 }
 0x3bf   :  { %v453_v57 = vadd.f32 %v452_v55, %v437_v54 }
 0x3c0   :  { %563 = vpush %v422_v56 }
 0x3c1   :  { %v454_v58 = vmul.f32 0.5, %v453_v57 }
 0x3c3   :  { %565 = vpush %v454_v58 }
 0x3f1   :  { %s564_s10 = spop %563 }
 0x3f2   :  { %457 = sst [smem:[#allocation3]] %s564_s10 }
 0x3f4   :  { %s566_s1 = spop %565 }
 0x3f5   :  { %460 = sst [smem:[#allocation3 + $0x1]] %s566_s1 }
 0x3f6   :  { %610 = shalt.err (!%p607_p4)
}
 0x3f7   :  { %s615_s0 = smov [#allocation3]  }
 0x3f8   :  { %470 = dma.smem_to_vmem %s615_s0, 16, %s468_s30, [#allocation4]  }
 0x3f9   :  { %611 = dma.done.wait [#allocation4], 16  }
 0x3fa   :  { %612 = vsyncadd [#allocation4], 4294967280 }
 0x3fb   :  { %474 = sfence }
 0x3fc   :  { %475 = vsyncpa [#allocation4], 1 }

</bundles_post_ra>
